<compile_context>
chip_gen: v7x
topology: tpu7x:2x2x1
jax: 0.10.0
libtpu: 0.0.40
codegen_flags: <defaults>
</compile_context>

<pallas_src>
import jax
import jax.numpy as jnp
from jax import lax
from jax.experimental import pallas as pl
from jax.experimental.pallas import tpu as pltpu


def _vgg_kernel(p_ref, w_ref, b_ref, o_ref):
    # p_ref: (HW, 9*Cin)   bf16 im2col patches for one batch element
    # w_ref: (9*Cin, Cout+1) bf16 fused conv weights (conv1 ++ conv2)
    # b_ref: (1, Cout+1)   f32 fused biases
    # o_ref: (HW, Cout+1)  f32 fused output: [:, :Cout] = ReLU(conv1),
    #                                        [:, Cout:] = conv2
    acc = jnp.dot(p_ref[...], w_ref[...], preferred_element_type=jnp.float32)
    acc = acc + b_ref[...]                      # (1, Cout+1) broadcasts

    cout = o_ref.shape[-1] - 1                  # ReLU only on the first Cout lanes
    col = lax.broadcasted_iota(jnp.int32, acc.shape, 1)
    o_ref[...] = jnp.where(col < cout, jnp.maximum(acc, 0.0), acc)


def vgg_forward(x_nchw, w1, b1, w2, b2):
    """x_nchw: (N, Cin, H, W); w1: (Cout, Cin, 3, 3); b1: (Cout,);
    w2: (1, Cin, 3, 3); b2: (1,).  Returns (out1, out2) in NCHW (f32)."""
    N, Cin, H, W = x_nchw.shape
    Cout = w1.shape[0]
    K = 9 * Cin
    Cf = Cout + 1      # fused output channels
    HW = H * W

    # --- wrapper-side prep (fused by jit): NCHW -> NHWC, pad=1, im2col -------
    x_nhwc = jnp.transpose(x_nchw, (0, 2, 3, 1))
    x_pad = jnp.pad(x_nhwc, ((0, 0), (1, 1), (1, 1), (0, 0)))
    # Patch column layout: (kh*3 + kw)*Cin + cin  (tap-major, channel-minor).
    patches = jnp.concatenate(
        [x_pad[:, kh:kh + H, kw:kw + W, :] for kh in range(3) for kw in range(3)],
        axis=-1)                                     # (N, H, W, 9*Cin)
    patches = patches.reshape(N * HW, K).astype(jnp.bfloat16)

    # Fused weights: (Cout+1, Cin, 3, 3) -> (kh, kw, cin, cout) -> (9*Cin, Cout+1)
    # Row layout (kh*3 + kw)*Cin + cin matches the patch column layout above.
    w_all = jnp.concatenate([w1, w2], axis=0)
    w_mat = jnp.transpose(w_all, (2, 3, 1, 0)).reshape(K, Cf).astype(jnp.bfloat16)
    b_all = jnp.concatenate([b1, b2], axis=0).reshape(1, Cf).astype(jnp.float32)

    out_flat = pl.pallas_call(
        _vgg_kernel,
        out_shape=jax.ShapeDtypeStruct((N * HW, Cf), jnp.float32),
        grid_spec=pltpu.PrefetchScalarGridSpec(
            num_scalar_prefetch=0,
            grid=(N,),  # one block of HW rows per batch element; "parallel"
                        # so v7x's two TensorCores both get work.
            in_specs=[
                pl.BlockSpec((HW, K), lambda n: (n, 0)),
                pl.BlockSpec((K, Cf), lambda n: (0, 0)),
                pl.BlockSpec((1, Cf), lambda n: (0, 0)),
            ],
            out_specs=pl.BlockSpec((HW, Cf), lambda n: (n, 0)),
        ),
        compiler_params=pltpu.CompilerParams(
            dimension_semantics=("parallel",)),
    )(patches, w_mat, b_all)

    # Split the fused output and restore NCHW to match the PyTorch module.
    out = out_flat.reshape(N, H, W, Cf)
    out1 = jnp.transpose(out[..., :Cout], (0, 3, 1, 2))
    out2 = jnp.transpose(out[..., Cout:], (0, 3, 1, 2))
    return out1, out2


def _conv_ref(x, w, b):
    # Pure-JAX f32 NCHW reference for verification.
    y = lax.conv_general_dilated(
        x, w, window_strides=(1, 1), padding=((1, 1), (1, 1)),
        dimension_numbers=("NCHW", "OIHW", "NCHW"))
    return y + b.reshape(1, -1, 1, 1)


if __name__ == "__main__":
    # Small shapes consistent with the module: insize=4, outsize=8.
    N, Cin, Cout, H, W = 2, 4, 8, 16, 16

    key = jax.random.PRNGKey(0)
    k1, k2, k3, k4, k5 = jax.random.split(key, 5)

    x = jax.random.normal(k1, (N, Cin, H, W), dtype=jnp.float32)
    # Deterministic parameter init (PyTorch-ish scale: 1/sqrt(fan_in)).
    fan_in = Cin * 3 * 3
    scale = 1.0 / jnp.sqrt(jnp.float32(fan_in))
    w1 = jax.random.uniform(k2, (Cout, Cin, 3, 3), jnp.float32, -scale, scale)
    b1 = jax.random.uniform(k3, (Cout,), jnp.float32, -scale, scale)
    w2 = jax.random.uniform(k4, (1, Cin, 3, 3), jnp.float32, -scale, scale)
    b2 = jax.random.uniform(k5, (1,), jnp.float32, -scale, scale)

    out1, out2 = jax.jit(vgg_forward)(x, w1, b1, w2, b2)
    jax.block_until_ready((out1, out2))

    # Verify against a pure-JAX f32 reference of the PyTorch forward.
    # Tolerance relaxed because the kernel feeds bf16 operands to the MXU
    # (f32 accumulation), per the performance review.
    ref1 = jnp.maximum(_conv_ref(x, w1, b1), 0.0)
    ref2 = _conv_ref(x, w2, b2)
    assert out1.shape == (N, Cout, H, W) and out2.shape == (N, 1, H, W)
    assert jnp.allclose(out1, ref1, atol=5e-2, rtol=5e-2)
    assert jnp.allclose(out2, ref2, atol=5e-2, rtol=5e-2)

    print("KERNEL_OK")
</pallas_src>

<mosaic_0001>
module attributes {stable_mosaic.version = 11 : i64} {
  func.func @_vgg_kernel(%arg0: i32, %arg1: memref<256x36xbf16, #tpu.memory_space<vmem>>, %arg2: memref<36x9xbf16, #tpu.memory_space<vmem>>, %arg3: memref<1x9xf32, #tpu.memory_space<vmem>>, %arg4: memref<256x9xf32, #tpu.memory_space<vmem>>) attributes {dimension_semantics = [#tpu.dimension_semantics<parallel>], iteration_bounds = array<i64: 2>, scalar_prefetch = 0 : i64, scratch_operands = 0 : i64, tpu.core_type = #tpu.core_type<tc>, window_params = [{transform_indices = @transform_0, window_bounds = array<i64: 256, 36>}, {pipeline_mode = #tpu.pipeline_mode<synchronous>, transform_indices = @transform_1, window_bounds = array<i64: 36, 9>}, {pipeline_mode = #tpu.pipeline_mode<synchronous>, transform_indices = @transform_2, window_bounds = array<i64: 1, 9>}, {transform_indices = @transform_3, window_bounds = array<i64: 256, 9>}]} {
    %c0 = arith.constant 0 : index
    %c0_0 = arith.constant 0 : index
    %0 = vector.load %arg1[%c0, %c0_0] : memref<256x36xbf16, #tpu.memory_space<vmem>>, vector<256x36xbf16>
    %c0_1 = arith.constant 0 : index
    %c0_2 = arith.constant 0 : index
    %1 = vector.load %arg2[%c0_1, %c0_2] : memref<36x9xbf16, #tpu.memory_space<vmem>>, vector<36x9xbf16>
    %cst = arith.constant dense<0.000000e+00> : vector<256x9xf32>
    %2 = tpu.matmul %0, %1, %cst {dimension_numbers = #tpu.dot_dimension_numbers<[1], [0], [0], [1], [0, 0, 1, 1], [], []>} : vector<256x36xbf16>, vector<36x9xbf16>, vector<256x9xf32> -> vector<256x9xf32>
    %c0_3 = arith.constant 0 : index
    %c0_4 = arith.constant 0 : index
    %3 = vector.load %arg3[%c0_3, %c0_4] : memref<1x9xf32, #tpu.memory_space<vmem>>, vector<1x9xf32>
    %4 = vector.broadcast %3 : vector<1x9xf32> to vector<256x9xf32>
    %5 = arith.addf %2, %4 : vector<256x9xf32>
    %6 = tpu.iota {dimensions = array<i32: 1>} : vector<256x9xi32>
    %c8_i32 = arith.constant 8 : i32
    %7 = vector.broadcast %c8_i32 : i32 to vector<256x9xi32>
    %8 = arith.cmpi slt, %6, %7 : vector<256x9xi32>
    %cst_5 = arith.constant 0.000000e+00 : f32
    %9 = vector.broadcast %cst_5 : f32 to vector<256x9xf32>
    %10 = arith.maximumf %5, %9 : vector<256x9xf32>
    %11 = arith.select %8, %10, %5 : vector<256x9xi1>, vector<256x9xf32>
    %c0_6 = arith.constant 0 : index
    %c0_7 = arith.constant 0 : index
    %12 = vector.load %arg4[%c0_6, %c0_7] : memref<256x9xf32, #tpu.memory_space<vmem>>, vector<256x9xf32>
    tpu.vector_store %arg4[%c0_6, %c0_7], %11 {strides = array<i32>} : memref<256x9xf32, #tpu.memory_space<vmem>>, vector<256x9xf32>,
    return
  }
  func.func @transform_0(%arg0: i32) -> (i32, i32) {
    %c0_i32 = arith.constant 0 : i32
    %c0_i32_0 = arith.constant 0 : i32
    return %arg0, %c0_i32 : i32, i32
  }
  func.func @transform_1(%arg0: i32) -> (i32, i32) {
    %c0_i32 = arith.constant 0 : i32
    %c0_i32_0 = arith.constant 0 : i32
    %c0_i32_1 = arith.constant 0 : i32
    return %c0_i32, %c0_i32_0 : i32, i32
  }
  func.func @transform_2(%arg0: i32) -> (i32, i32) {
    %c0_i32 = arith.constant 0 : i32
    %c0_i32_0 = arith.constant 0 : i32
    %c0_i32_1 = arith.constant 0 : i32
    return %c0_i32, %c0_i32_0 : i32, i32
  }
  func.func @transform_3(%arg0: i32) -> (i32, i32) {
    %c0_i32 = arith.constant 0 : i32
    %c0_i32_0 = arith.constant 0 : i32
    return %arg0, %c0_i32 : i32, i32
  }
}

</mosaic_0001>

<bundles_post_ra>
// kernel: vgg_forward.1
= control target key start
LH: loop header
LB: loop body
LE: loop exit
PB: predicated region body
PF: predicated region fallthrough
CT: control target
= control target key end

     0   :  { %s851_s12 = smov 0   ;;  %s1085_s0 = inlined_call_operand.vmem [shape: bf16[512,36], index: 0, kind: input, shape index: {}]   ;;  %s1086_s1 = inlined_call_operand.vmem [shape: bf16[36,9], index: 1, kind: input, shape index: {}]   ;;  %s1087_s2 = inlined_call_operand.vmem [shape: f32[1,9], index: 2, kind: input, shape index: {}]   ;;  %s1088_s3 = inlined_call_operand.vmem [shape: f32[512,9], index: 3, kind: output, shape index: {}]  }
   0x1 LB: > { %s684_s13 = sadd.s32 4294967295, %s829_s12   ;;  %p688_p0 = scmp.ge.s32.totalorder %s829_s12, 1  ;;  %s829_s12 = sphi %s851_s12, %s13_s12  }
   0x2   : > { %p138_p1 = scmp.lt.s32.totalorder %s829_s12, 3 }
   0x4   : > { %p139_p2 = pnand %p688_p0, %p138_p1 }
   0x5   : > { %v804_v0 = vld [vmem:[%s1086_s1] sm:$0xff] (!%p139_p2)   ;;  %v805_v1 = vld [vmem:[%s1086_s1 + $0x8] sm:$0xff] (!%p139_p2)   ;;  %s689_s18 = sshll.u32 (!%p139_p2), %s684_s13, 5  ;;  %v806_v2 = vld [vmem:[%s1086_s1 + $0x10] ss:$0 sps:$4 sm:$0x33] (!%p139_p2)   ;;  %v528_v20 = vlaneseq (!%p139_p2) }
   0x6   : > { %142 = sbr.rel (%p139_p2) target bundleno = 264 (0x108), region = 32  ;;  %750 = vmatprep.subr.bf16.mxu0 (!%p139_p2), %v804_v0  ;;  %788 = vmatprep.subr.bf16.mxu1 (!%p139_p2), %v804_v0  ;;  %p163_p3 = scmp.lt.s32.totalorder (!%p139_p2), %s689_s18, 63  ;;  %vm363_vm0 = vcmask (!%p139_p2), 1041408   ;;  %vm314_vm1 = vcmask (!%p139_p2), 293888   ;;  %v911_v21 = vld [vmem:[%s1087_s2] ss:$0 sm:$0xff] (!%p139_p2) }
   0x7   : > { %751 = vmatpush3.bf16.msra.mxu0 (!%p139_p2), %v804_v0  ;;  %791 = vmatpush3.bf16.msra.mxu1 (!%p139_p2), %v804_v0  ;;  %v365_v3 = vsel (!%p139_p2), %vm363_vm0, %v806_v2, 0  ;;  %v913_v22 = vand.u32 (!%p139_p2), 127, %v528_v20  ;;  %vm595_vm3 = vcmask (!%p139_p2), 72704  }
   0x8   : > { %752 = vmatprep.subr.bf16.mxu0 (!%p139_p2), %v805_v1  ;;  %789 = vmatprep.subr.bf16.mxu1 (!%p139_p2), %v805_v1 }
   0x9   : > { %vm530_vm2 = vcmp.lt.s32.totalorder (!%p139_p2), %v913_v22, 8 }
   0xb   : > { %753 = vmatpush3.bf16.msra.mxu0 (!%p139_p2), %v805_v1  ;;  %792 = vmatpush3.bf16.msra.mxu1 (!%p139_p2), %v805_v1 }
   0xc   : > { %794 = vmatprep.subr.msk.bf16.mxu0 (!%p139_p2), %vm363_vm0, %v806_v2  ;;  %795 = vmatprep.subr.msk.bf16.mxu1 (!%p139_p2), %vm363_vm0, %v806_v2 }
   0xd   : > { %s1090_s18 = smov (!%p163_p3, %s689_s18), 63 }
   0xe   : > { %s690_s21 = sshll.u32 %s1090_s18, 2  ;;  %s692_s27 = sshll.u32 %s1090_s18, 3 }
   0xf   : > { %s874_s24 = scalar_lea.vmem %s1085_s0, %s690_s21  ;;  %755 = vmatpush3.bf16.msra.mxu0 %v365_v3  ;;  %793 = vmatpush3.bf16.msra.mxu1 %v365_v3  ;;  %s924_s30 = scalar_lea.vmem %s1088_s3, %s692_s27 }
  0x10   : > { %v807_v4 = vld [vmem:[%s874_s24] sm:$0xff]   ;;  %v809_v6 = vld [vmem:[%s874_s24 + $0x8] sm:$0xff]   ;;  %v811_v8 = vld [vmem:[%s874_s24 + $0x10] sm:$0xff]  }
  0x11   : > { %v808_v5 = vld [vmem:[%s874_s24 + $0x40] sm:$0xff]   ;;  %756 = vmatprep.mubr.msk.bf16.mxu0 %vm314_vm1, %v807_v4  ;;  %v810_v7 = vld [vmem:[%s874_s24 + $0x48] sm:$0xff]   ;;  %v812_v9 = vld [vmem:[%s874_s24 + $0x50] sm:$0xff]  }
  0x12   : > { %772 = vmatprep.mubr.msk.bf16.mxu1 %vm314_vm1, %v808_v5  ;;  %757 = vmatmul.mubr.msk.bf16.vlgmr.msra.gmra.mrb[0].mxu0 %vm314_vm1, %v809_v6  ;;  %v813_v10 = vld [vmem:[%s874_s24 + $0x18] sm:$0xff]   ;;  %v815_v12 = vld [vmem:[%s874_s24 + $0x20] sm:$0xff]   ;;  %v817_v14 = vld [vmem:[%s874_s24 + $0x28] sm:$0xff]  }
  0x13   : > { %773 = vmatmul.mubr.msk.bf16.vlgmr.msra.gmra.mrb[0].mxu1 %vm314_vm1, %v810_v7  ;;  %760 = vmatprep.mubr.msk.bf16.mxu0 %vm314_vm1, %v811_v8  ;;  %v814_v11 = vld [vmem:[%s874_s24 + $0x58] sm:$0xff]   ;;  %v816_v13 = vld [vmem:[%s874_s24 + $0x60] sm:$0xff]   ;;  %v818_v15 = vld [vmem:[%s874_s24 + $0x68] sm:$0xff]  }
  0x14   : > { %776 = vmatprep.mubr.msk.bf16.mxu1 %vm314_vm1, %v812_v9  ;;  %v819_v16 = vld [vmem:[%s874_s24 + $0x30] sm:$0xff]   ;;  %v821_v18 = vld [vmem:[%s874_s24 + $0x38] sm:$0xff]  }
  0x15   : > { %v820_v17 = vld [vmem:[%s874_s24 + $0x70] sm:$0xff]   ;;  %v822_v19 = vld [vmem:[%s874_s24 + $0x78] sm:$0xff]  }
  0x1a   : > { %761 = vmatmul.mubr.msk.bf16.gmra.mrb[4].mxu0 %vm314_vm1, %v813_v10 }
  0x1b   : > { %777 = vmatmul.mubr.msk.bf16.gmra.mrb[4].mxu1 %vm314_vm1, %v814_v11  ;;  %764 = vmatprep.mubr.msk.bf16.mxu0 %vm314_vm1, %v815_v12 }
  0x1c   : > { %780 = vmatprep.mubr.msk.bf16.mxu1 %vm314_vm1, %v816_v13 }
  0x22   : > { %765 = vmatmul.mubr.msk.bf16.gmra.mrb[8].mxu0 %vm314_vm1, %v817_v14 }
  0x23   : > { %781 = vmatmul.mubr.msk.bf16.gmra.mrb[8].mxu1 %vm314_vm1, %v818_v15  ;;  %768 = vmatprep.mubr.msk.bf16.mxu0 %vm314_vm1, %v819_v16 }
  0x24   : > { %784 = vmatprep.mubr.msk.bf16.mxu1 %vm314_vm1, %v820_v17 }
  0x2a   : > { %769 = vmatmul.mubr.msk.bf16.gmra.mrb[12].mxu0 %vm314_vm1, %v821_v18 }
  0x2b   : > { %785 = vmatmul.mubr.msk.bf16.gmra.mrb[12].mxu1 %vm314_vm1, %v822_v19 }
  0xe5   : > { %v758_v23 = vpop.f32.mrb[0].mxu0 }
  0xe6   : > { %v774_v24 = vpop.f32.mrb[0].mxu1  ;;  %v410_v25 = vadd.f32 %v758_v23, %v911_v21  ;;  %v401_v27 = vpop.f32.mrb[1].mxu0 }
  0xe7   : > { %v474_v26 = vadd.f32 %v774_v24, %v911_v21  ;;  %v465_v28 = vpop.f32.mrb[1].mxu1  ;;  %v402_v29 = vadd.f32 %v911_v21, %v401_v27  ;;  %v759_v31 = vpop.f32.mrb[2].mxu0 }
  0xe8   : > { %v466_v30 = vadd.f32 %v911_v21, %v465_v28  ;;  %v775_v32 = vpop.f32.mrb[2].mxu1  ;;  %v533_v33 = vmax.f32 %v410_v25, 0.0  ;;  %v413_v35 = vadd.f32 %v759_v31, %v911_v21  ;;  %v404_v37 = vpop.f32.mrb[3].mxu0 }
  0xe9   : > { %v549_v34 = vmax.f32 %v474_v26, 0.0  ;;  %v477_v36 = vadd.f32 %v775_v32, %v911_v21  ;;  %v468_v38 = vpop.f32.mrb[3].mxu1  ;;  %v531_v39 = vmax.f32 %v402_v29, 0.0  ;;  %v405_v41 = vadd.f32 %v911_v21, %v404_v37 }
  0xea   : > { %v547_v40 = vmax.f32 %v466_v30, 0.0  ;;  %v469_v42 = vadd.f32 %v911_v21, %v468_v38  ;;  %v565_v43 = vsel %vm530_vm2, %v533_v33, %v410_v25  ;;  %v534_v45 = vmax.f32 %v413_v35, 0.0 }
  0xeb   : > { %v581_v44 = vsel %vm530_vm2, %v549_v34, %v474_v26  ;;  %v550_v46 = vmax.f32 %v477_v36, 0.0  ;;  %598 = vst.msk [vmem:[%s924_s30 + $0x10] sm:$0xff] %vm595_vm3, %v565_v43  ;;  %v563_v47 = vsel %vm530_vm2, %v531_v39, %v402_v29  ;;  %v532_v49 = vmax.f32 %v405_v41, 0.0 }
  0xec   : > { %614 = vst.msk [vmem:[%s924_s30 + $0x90] sm:$0xff] %vm595_vm3, %v581_v44  ;;  %v579_v48 = vsel %vm530_vm2, %v547_v40, %v466_v30  ;;  %v548_v50 = vmax.f32 %v469_v42, 0.0  ;;  %596 = vst.msk [vmem:[%s924_s30] sm:$0xff] %vm595_vm3, %v563_v47  ;;  %v566_v51 = vsel %vm530_vm2, %v534_v45, %v413_v35 }
  0xed   : > { %612 = vst.msk [vmem:[%s924_s30 + $0x80] sm:$0xff] %vm595_vm3, %v579_v48  ;;  %v582_v52 = vsel %vm530_vm2, %v550_v46, %v477_v36  ;;  %599 = vst.msk [vmem:[%s924_s30 + $0x18] sm:$0xff] %vm595_vm3, %v566_v51  ;;  %v564_v53 = vsel %vm530_vm2, %v532_v49, %v405_v41  ;;  %v762_v55 = vpop.f32.mrb[4].mxu0 }
  0xee   : > { %615 = vst.msk [vmem:[%s924_s30 + $0x98] sm:$0xff] %vm595_vm3, %v582_v52  ;;  %v580_v54 = vsel %vm530_vm2, %v548_v50, %v469_v42  ;;  %v778_v56 = vpop.f32.mrb[4].mxu1  ;;  %597 = vst.msk [vmem:[%s924_s30 + $0x8] sm:$0xff] %vm595_vm3, %v564_v53  ;;  %v426_v57 = vadd.f32 %v762_v55, %v911_v21  ;;  %v417_v59 = vpop.f32.mrb[5].mxu0 }
  0xef   : > { %613 = vst.msk [vmem:[%s924_s30 + $0x88] sm:$0xff] %vm595_vm3, %v580_v54  ;;  %v490_v58 = vadd.f32 %v778_v56, %v911_v21  ;;  %v481_v60 = vpop.f32.mrb[5].mxu1  ;;  %v418_v61 = vadd.f32 %v911_v21, %v417_v59  ;;  %v763_v63 = vpop.f32.mrb[6].mxu0 }
  0xf0   : > { %v482_v62 = vadd.f32 %v911_v21, %v481_v60  ;;  %v779_v0 = vpop.f32.mrb[6].mxu1  ;;  %v537_v1 = vmax.f32 %v426_v57, 0.0  ;;  %v429_v3 = vadd.f32 %v763_v63, %v911_v21  ;;  %v420_v5 = vpop.f32.mrb[7].mxu0 }
  0xf1   : > { %v553_v2 = vmax.f32 %v490_v58, 0.0  ;;  %v493_v4 = vadd.f32 %v779_v0, %v911_v21  ;;  %v484_v6 = vpop.f32.mrb[7].mxu1  ;;  %v535_v7 = vmax.f32 %v418_v61, 0.0  ;;  %v421_v9 = vadd.f32 %v911_v21, %v420_v5 }
  0xf2   : > { %v551_v8 = vmax.f32 %v482_v62, 0.0  ;;  %v485_v10 = vadd.f32 %v911_v21, %v484_v6  ;;  %v569_v11 = vsel %vm530_vm2, %v537_v1, %v426_v57  ;;  %v538_v13 = vmax.f32 %v429_v3, 0.0 }
  0xf3   : > { %v585_v12 = vsel %vm530_vm2, %v553_v2, %v490_v58  ;;  %v554_v14 = vmax.f32 %v493_v4, 0.0  ;;  %602 = vst.msk [vmem:[%s924_s30 + $0x30] sm:$0xff] %vm595_vm3, %v569_v11  ;;  %v567_v15 = vsel %vm530_vm2, %v535_v7, %v418_v61  ;;  %v536_v17 = vmax.f32 %v421_v9, 0.0 }
  0xf4   : > { %618 = vst.msk [vmem:[%s924_s30 + $0xb0] sm:$0xff] %vm595_vm3, %v585_v12  ;;  %v583_v16 = vsel %vm530_vm2, %v551_v8, %v482_v62  ;;  %v552_v18 = vmax.f32 %v485_v10, 0.0  ;;  %600 = vst.msk [vmem:[%s924_s30 + $0x20] sm:$0xff] %vm595_vm3, %v567_v15  ;;  %v570_v19 = vsel %vm530_vm2, %v538_v13, %v429_v3 }
  0xf5   : > { %616 = vst.msk [vmem:[%s924_s30 + $0xa0] sm:$0xff] %vm595_vm3, %v583_v16  ;;  %v586_v20 = vsel %vm530_vm2, %v554_v14, %v493_v4  ;;  %603 = vst.msk [vmem:[%s924_s30 + $0x38] sm:$0xff] %vm595_vm3, %v570_v19  ;;  %v568_v23 = vsel %vm530_vm2, %v536_v17, %v421_v9  ;;  %v766_v25 = vpop.f32.mrb[8].mxu0 }
  0xf6   : > { %619 = vst.msk [vmem:[%s924_s30 + $0xb8] sm:$0xff] %vm595_vm3, %v586_v20  ;;  %v584_v24 = vsel %vm530_vm2, %v552_v18, %v485_v10  ;;  %v782_v26 = vpop.f32.mrb[8].mxu1  ;;  %601 = vst.msk [vmem:[%s924_s30 + $0x28] sm:$0xff] %vm595_vm3, %v568_v23  ;;  %v442_v27 = vadd.f32 %v766_v25, %v911_v21  ;;  %v433_v29 = vpop.f32.mrb[9].mxu0 }
  0xf7   : > { %617 = vst.msk [vmem:[%s924_s30 + $0xa8] sm:$0xff] %vm595_vm3, %v584_v24  ;;  %v506_v28 = vadd.f32 %v782_v26, %v911_v21  ;;  %v497_v30 = vpop.f32.mrb[9].mxu1  ;;  %v434_v31 = vadd.f32 %v911_v21, %v433_v29  ;;  %v767_v33 = vpop.f32.mrb[10].mxu0 }
  0xf8   : > { %v498_v32 = vadd.f32 %v911_v21, %v497_v30  ;;  %v783_v34 = vpop.f32.mrb[10].mxu1  ;;  %v541_v35 = vmax.f32 %v442_v27, 0.0  ;;  %v445_v37 = vadd.f32 %v767_v33, %v911_v21  ;;  %v436_v39 = vpop.f32.mrb[11].mxu0 }
  0xf9   : > { %v557_v36 = vmax.f32 %v506_v28, 0.0  ;;  %v509_v38 = vadd.f32 %v783_v34, %v911_v21  ;;  %v500_v40 = vpop.f32.mrb[11].mxu1  ;;  %v539_v41 = vmax.f32 %v434_v31, 0.0  ;;  %v437_v43 = vadd.f32 %v911_v21, %v436_v39 }
  0xfa   : > { %v555_v42 = vmax.f32 %v498_v32, 0.0  ;;  %v501_v44 = vadd.f32 %v911_v21, %v500_v40  ;;  %v573_v45 = vsel %vm530_vm2, %v541_v35, %v442_v27  ;;  %v542_v47 = vmax.f32 %v445_v37, 0.0 }
  0xfb   : > { %v589_v46 = vsel %vm530_vm2, %v557_v36, %v506_v28  ;;  %v558_v48 = vmax.f32 %v509_v38, 0.0  ;;  %606 = vst.msk [vmem:[%s924_s30 + $0x50] sm:$0xff] %vm595_vm3, %v573_v45  ;;  %v571_v49 = vsel %vm530_vm2, %v539_v41, %v434_v31  ;;  %v540_v51 = vmax.f32 %v437_v43, 0.0 }
  0xfc   : > { %622 = vst.msk [vmem:[%s924_s30 + $0xd0] sm:$0xff] %vm595_vm3, %v589_v46  ;;  %v587_v50 = vsel %vm530_vm2, %v555_v42, %v498_v32  ;;  %v556_v52 = vmax.f32 %v501_v44, 0.0  ;;  %604 = vst.msk [vmem:[%s924_s30 + $0x40] sm:$0xff] %vm595_vm3, %v571_v49  ;;  %v574_v53 = vsel %vm530_vm2, %v542_v47, %v445_v37 }
  0xfd   : > { %620 = vst.msk [vmem:[%s924_s30 + $0xc0] sm:$0xff] %vm595_vm3, %v587_v50  ;;  %v590_v54 = vsel %vm530_vm2, %v558_v48, %v509_v38  ;;  %607 = vst.msk [vmem:[%s924_s30 + $0x58] sm:$0xff] %vm595_vm3, %v574_v53  ;;  %v572_v55 = vsel %vm530_vm2, %v540_v51, %v437_v43  ;;  %v770_v57 = vpop.f32.mrb[12].mxu0 }
  0xfe   : > { %623 = vst.msk [vmem:[%s924_s30 + $0xd8] sm:$0xff] %vm595_vm3, %v590_v54  ;;  %v588_v56 = vsel %vm530_vm2, %v556_v52, %v501_v44  ;;  %v786_v58 = vpop.f32.mrb[12].mxu1  ;;  %605 = vst.msk [vmem:[%s924_s30 + $0x48] sm:$0xff] %vm595_vm3, %v572_v55  ;;  %v458_v59 = vadd.f32 %v770_v57, %v911_v21  ;;  %v449_v61 = vpop.f32.mrb[13].mxu0 }
  0xff   : > { %621 = vst.msk [vmem:[%s924_s30 + $0xc8] sm:$0xff] %vm595_vm3, %v588_v56  ;;  %v522_v60 = vadd.f32 %v786_v58, %v911_v21  ;;  %v513_v62 = vpop.f32.mrb[13].mxu1  ;;  %v450_v63 = vadd.f32 %v911_v21, %v449_v61  ;;  %v771_v1 = vpop.f32.mrb[14].mxu0 }
 0x100   : > { %v514_v0 = vadd.f32 %v911_v21, %v513_v62  ;;  %v787_v2 = vpop.f32.mrb[14].mxu1  ;;  %v545_v3 = vmax.f32 %v458_v59, 0.0  ;;  %v461_v5 = vadd.f32 %v771_v1, %v911_v21  ;;  %v452_v7 = vpop.f32.mrb[15].mxu0 }
 0x101   : > { %v561_v4 = vmax.f32 %v522_v60, 0.0  ;;  %v525_v6 = vadd.f32 %v787_v2, %v911_v21  ;;  %v516_v8 = vpop.f32.mrb[15].mxu1  ;;  %v543_v9 = vmax.f32 %v450_v63, 0.0  ;;  %v453_v11 = vadd.f32 %v911_v21, %v452_v7 }
 0x102   : > { %v559_v10 = vmax.f32 %v514_v0, 0.0  ;;  %v517_v12 = vadd.f32 %v911_v21, %v516_v8  ;;  %v577_v13 = vsel %vm530_vm2, %v545_v3, %v458_v59  ;;  %v546_v15 = vmax.f32 %v461_v5, 0.0 }
 0x103   : > { %v593_v14 = vsel %vm530_vm2, %v561_v4, %v522_v60  ;;  %v562_v16 = vmax.f32 %v525_v6, 0.0  ;;  %610 = vst.msk [vmem:[%s924_s30 + $0x70] sm:$0xff] %vm595_vm3, %v577_v13  ;;  %v575_v17 = vsel %vm530_vm2, %v543_v9, %v450_v63  ;;  %v544_v18 = vmax.f32 %v453_v11, 0.0 }
 0x104   : > { %626 = vst.msk [vmem:[%s924_s30 + $0xf0] sm:$0xff] %vm595_vm3, %v593_v14  ;;  %v591_v21 = vsel %vm530_vm2, %v559_v10, %v514_v0  ;;  %v560_v19 = vmax.f32 %v517_v12, 0.0  ;;  %608 = vst.msk [vmem:[%s924_s30 + $0x60] sm:$0xff] %vm595_vm3, %v575_v17  ;;  %v578_v20 = vsel %vm530_vm2, %v546_v15, %v461_v5 }
 0x105   : > { %624 = vst.msk [vmem:[%s924_s30 + $0xe0] sm:$0xff] %vm595_vm3, %v591_v21  ;;  %v594_v23 = vsel %vm530_vm2, %v562_v16, %v525_v6  ;;  %611 = vst.msk [vmem:[%s924_s30 + $0x78] sm:$0xff] %vm595_vm3, %v578_v20  ;;  %v576_v24 = vsel %vm530_vm2, %v544_v18, %v453_v11 }
 0x106   : > { %627 = vst.msk [vmem:[%s924_s30 + $0xf8] sm:$0xff] %vm595_vm3, %v594_v23  ;;  %v592_v25 = vsel %vm530_vm2, %v560_v19, %v517_v12  ;;  %609 = vst.msk [vmem:[%s924_s30 + $0x68] sm:$0xff] %vm595_vm3, %v576_v24 }
 0x107   : > { %625 = vst.msk [vmem:[%s924_s30 + $0xe8] sm:$0xff] %vm595_vm3, %v592_v25 }
 0x108 PF: > { %s13_s12 = sadd.s32 1, %s829_s12  }
 0x109   : > { %p10_p4 = scmp.ge.s32.totalorder %s13_s12, 4  }
 0x10b   :  { %12 = sbr.rel (!%p10_p4) target bundleno = 1 (0x1), region = 62 }

</bundles_post_ra>
